<compile_context>
chip_gen: v5e
topology: v5e:2x2
jax: 0.10.0
libtpu: 0.0.40
codegen_flags: <defaults>
</compile_context>

<pallas_src>
import math

import jax
import jax.numpy as jnp
from jax.experimental import pallas as pl
from jax.experimental.pallas import tpu as pltpu


# ---------------------------------------------------------------------------
# Kernels
# ---------------------------------------------------------------------------
def _linear_bias_kernel_single_k(x_ref, w_ref, b_ref, o_ref):
    """One (tm, tn) output tile; the whole K dimension fits in one block."""
    acc = jnp.dot(x_ref[...], w_ref[...], preferred_element_type=jnp.float32)
    o_ref[...] = (acc + b_ref[...].astype(jnp.float32)).astype(o_ref.dtype)


def _linear_bias_kernel_tiled_k(x_ref, w_ref, b_ref, o_ref, acc_ref):
    """One (tm, tn) output tile; accumulate over the K grid axis."""
    k = pl.program_id(2)

    @pl.when(k == 0)
    def _init():
        acc_ref[...] = jnp.zeros_like(acc_ref)

    acc_ref[...] += jnp.dot(
        x_ref[...], w_ref[...], preferred_element_type=jnp.float32
    )

    @pl.when(k == pl.num_programs(2) - 1)
    def _finish():
        # Bias add + cast epilogue in f32 (VPU), lane-dense store.
        o_ref[...] = (acc_ref[...] + b_ref[...].astype(jnp.float32)).astype(
            o_ref.dtype
        )


# ---------------------------------------------------------------------------
# Helpers
# ---------------------------------------------------------------------------
def _round_up(x: int, m: int) -> int:
    return ((x + m - 1) // m) * m


def _pick_tile(dim_pad: int, max_tile: int, align: int) -> int:
    """Largest multiple of `align` that divides `dim_pad` and is <= max_tile."""
    t = min(max_tile, dim_pad)
    t = max((t // align) * align, align)
    while dim_pad % t != 0:
        t -= align
    return t


def prepare_text_encoder_params(weight, bias, *, compute_dtype=None):
    """One-time parameter prep (call at init, NOT per forward).

    weight: (D_out, D_in)  PyTorch Linear layout
    bias:   (D_out,)
    Returns (w_t_pad, b_row_pad, d_out) with
      w_t_pad:   (round_up(D_in,128), round_up(D_out,128))
      b_row_pad: (1, round_up(D_out,128))
    """
    d_out, d_in = weight.shape
    d_in_pad = _round_up(d_in, 128)
    d_out_pad = _round_up(d_out, 128)

    w_t = jnp.pad(weight.T, ((0, d_in_pad - d_in), (0, d_out_pad - d_out)))
    b_row = jnp.pad(bias, (0, d_out_pad - d_out)).reshape(1, d_out_pad)

    if compute_dtype is not None:
        w_t = w_t.astype(compute_dtype)  # e.g. bf16 for v6e/v5e MXU
    return w_t, b_row, d_out


def text_encoder_forward(
    text,
    w_t_pad,
    b_row_pad,
    out_dim,
    *,
    block_b: int = 256,
    block_n: int = 512,
    block_k: int = 512,
    compute_dtype=None,
    out_dtype=None,
):
    """y = text @ W.T + b using pre-prepared (padded, transposed) params."""
    b, d_in = text.shape
    d_in_pad, d_out_pad = w_t_pad.shape
    out_dtype = out_dtype if out_dtype is not None else text.dtype

    # Tile sizes: multiples of (8, 128), divide the padded dims exactly.
    m_pad = _round_up(b, 8)
    tm = _pick_tile(m_pad, block_b, 8)
    tn = _pick_tile(d_out_pad, block_n, 128)
    tk = _pick_tile(d_in_pad, block_k, 128)

    # Pad activations (per-call; a no-op when already aligned, cheap otherwise).
    x = text
    if compute_dtype is not None:
        x = x.astype(compute_dtype)
    if (m_pad - b) or (d_in_pad - d_in):
        x = jnp.pad(x, ((0, m_pad - b), (0, d_in_pad - d_in)))

    k_steps = d_in_pad // tk
    grid_mn = (m_pad // tm, d_out_pad // tn)

    # Explicit VMEM budget: double-buffered input/output tiles + f32 accumulator,
    # with 2x headroom, clamped well under v7x's 64 MiB physical VMEM.
    in_item = jnp.dtype(x.dtype).itemsize
    out_item = jnp.dtype(out_dtype).itemsize
    est = (
        2 * (tm * tk + tk * tn + tn) * in_item
        + 2 * tm * tn * out_item
        + tm * tn * 4
    )
    vmem_limit = int(min(max(2 * est, 4 * 1024 * 1024), 48 * 1024 * 1024))

    if k_steps == 1:
        # Fast path: no reduction axis, no accumulator scratch.
        out_padded = pl.pallas_call(
            _linear_bias_kernel_single_k,
            out_shape=jax.ShapeDtypeStruct((m_pad, d_out_pad), out_dtype),
            grid=grid_mn,
            in_specs=[
                pl.BlockSpec((tm, tk), lambda i, j: (i, 0)),
                pl.BlockSpec((tk, tn), lambda i, j: (0, j)),
                pl.BlockSpec((1, tn), lambda i, j: (0, j)),
            ],
            out_specs=pl.BlockSpec((tm, tn), lambda i, j: (i, j)),
            compiler_params=pltpu.CompilerParams(
                dimension_semantics=("parallel", "parallel"),
                vmem_limit_bytes=vmem_limit,
            ),
        )(x, w_t_pad, b_row_pad)
    else:
        # General path: K-tiled reduction with f32 VMEM accumulator.
        out_padded = pl.pallas_call(
            _linear_bias_kernel_tiled_k,
            out_shape=jax.ShapeDtypeStruct((m_pad, d_out_pad), out_dtype),
            grid=(*grid_mn, k_steps),
            in_specs=[
                pl.BlockSpec((tm, tk), lambda i, j, k: (i, k)),
                pl.BlockSpec((tk, tn), lambda i, j, k: (k, j)),
                pl.BlockSpec((1, tn), lambda i, j, k: (0, j)),
            ],
            out_specs=pl.BlockSpec((tm, tn), lambda i, j, k: (i, j)),
            scratch_shapes=[pltpu.VMEM((tm, tn), jnp.float32)],
            compiler_params=pltpu.CompilerParams(
                dimension_semantics=("parallel", "parallel", "arbitrary"),
                vmem_limit_bytes=vmem_limit,
            ),
        )(x, w_t_pad, b_row_pad)

    return out_padded[:b, :out_dim]


# ---------------------------------------------------------------------------
# Demo / correctness check
# ---------------------------------------------------------------------------
if __name__ == "__main__":
    # Small shapes consistent with the module: batch=8, text_input_dim=32,
    # text_embedding_dim=16.
    B, D_IN, D_OUT = 8, 32, 16

    key = jax.random.PRNGKey(0)
    k_x, k_w, k_b = jax.random.split(key, 3)

    text = jax.random.normal(k_x, (B, D_IN), dtype=jnp.float32)
    bound = 1.0 / math.sqrt(D_IN)
    weight = jax.random.uniform(
        k_w, (D_OUT, D_IN), minval=-bound, maxval=bound, dtype=jnp.float32
    )
    bias = jax.random.uniform(
        k_b, (D_OUT,), minval=-bound, maxval=bound, dtype=jnp.float32
    )

    # One-time parameter prep (transpose + lane-dense padding), outside the
    # per-call path. For v6e/v5e production sizes pass compute_dtype=jnp.bfloat16.
    w_t_pad, b_row_pad, out_dim = prepare_text_encoder_params(weight, bias)

    fwd = jax.jit(
        lambda t: text_encoder_forward(t, w_t_pad, b_row_pad, out_dim)
    )
    out = jax.block_until_ready(fwd(text))

    # Reference: plain nn.Linear forward.
    ref = text @ weight.T + bias
    assert out.shape == (B, D_OUT)
    assert jnp.allclose(out, ref, atol=1e-5, rtol=1e-5)

    # Also exercise the K-tiled path (forces multiple K blocks) for coverage.
    B2, D_IN2, D_OUT2 = 64, 384, 256
    k_x2, k_w2, k_b2 = jax.random.split(jax.random.PRNGKey(1), 3)
    text2 = jax.random.normal(k_x2, (B2, D_IN2), dtype=jnp.float32)
    w2 = jax.random.normal(k_w2, (D_OUT2, D_IN2), dtype=jnp.float32) * 0.05
    b2 = jax.random.normal(k_b2, (D_OUT2,), dtype=jnp.float32) * 0.05
    w2_pad, b2_pad, out_dim2 = prepare_text_encoder_params(w2, b2)
    out2 = jax.block_until_ready(
        jax.jit(
            lambda t: text_encoder_forward(
                t, w2_pad, b2_pad, out_dim2, block_k=128
            )
        )(text2)
    )
    ref2 = text2 @ w2.T + b2
    assert out2.shape == (B2, D_OUT2)
    assert jnp.allclose(out2, ref2, atol=1e-4, rtol=1e-4)

    # NOTE: at the toy size the op is launch-latency bound and a fused jnp.dot
    # would win; the tiled kernels above are the production-size implementation.
    print("KERNEL_OK")
</pallas_src>

<mosaic_0001>
module attributes {stable_mosaic.version = 11 : i64} {
  func.func @_linear_bias_kernel_single_k(%arg0: i32, %arg1: i32, %arg2: memref<8x128xf32, #tpu.memory_space<vmem>>, %arg3: memref<128x128xf32, #tpu.memory_space<vmem>>, %arg4: memref<1x128xf32, #tpu.memory_space<vmem>>, %arg5: memref<8x128xf32, #tpu.memory_space<vmem>>) attributes {dimension_semantics = [#tpu.dimension_semantics<parallel>, #tpu.dimension_semantics<parallel>], iteration_bounds = array<i64: 1, 1>, scalar_prefetch = 0 : i64, scratch_operands = 0 : i64, tpu.core_type = #tpu.core_type<tc>, window_params = [{transform_indices = @transform_0, window_bounds = array<i64: 8, 128>}, {transform_indices = @transform_1, window_bounds = array<i64: 128, 128>}, {transform_indices = @transform_2, window_bounds = array<i64: 1, 128>}, {transform_indices = @transform_3, window_bounds = array<i64: 8, 128>}]} {
    %c0 = arith.constant 0 : index
    %c0_0 = arith.constant 0 : index
    %0 = vector.load %arg2[%c0, %c0_0] : memref<8x128xf32, #tpu.memory_space<vmem>>, vector<8x128xf32>
    %c0_1 = arith.constant 0 : index
    %c0_2 = arith.constant 0 : index
    %1 = vector.load %arg3[%c0_1, %c0_2] : memref<128x128xf32, #tpu.memory_space<vmem>>, vector<128x128xf32>
    %cst = arith.constant dense<0.000000e+00> : vector<8x128xf32>
    %2 = tpu.matmul %0, %1, %cst {dimension_numbers = #tpu.dot_dimension_numbers<[1], [0], [0], [1], [0, 0, 1, 1], [], []>} : vector<8x128xf32>, vector<128x128xf32>, vector<8x128xf32> -> vector<8x128xf32>
    %c0_3 = arith.constant 0 : index
    %c0_4 = arith.constant 0 : index
    %3 = vector.load %arg4[%c0_3, %c0_4] : memref<1x128xf32, #tpu.memory_space<vmem>>, vector<1x128xf32>
    %4 = vector.broadcast %3 : vector<1x128xf32> to vector<8x128xf32>
    %5 = arith.addf %2, %4 : vector<8x128xf32>
    %c0_5 = arith.constant 0 : index
    %c0_6 = arith.constant 0 : index
    %6 = vector.load %arg5[%c0_5, %c0_6] : memref<8x128xf32, #tpu.memory_space<vmem>>, vector<8x128xf32>
    tpu.vector_store %arg5[%c0_5, %c0_6], %5 {strides = array<i32>} : memref<8x128xf32, #tpu.memory_space<vmem>>, vector<8x128xf32>,
    return
  }
  func.func @transform_0(%arg0: i32, %arg1: i32) -> (i32, i32) {
    %c0_i32 = arith.constant 0 : i32
    %c0_i32_0 = arith.constant 0 : i32
    return %arg0, %c0_i32 : i32, i32
  }
  func.func @transform_1(%arg0: i32, %arg1: i32) -> (i32, i32) {
    %c0_i32 = arith.constant 0 : i32
    %c0_i32_0 = arith.constant 0 : i32
    return %c0_i32, %arg1 : i32, i32
  }
  func.func @transform_2(%arg0: i32, %arg1: i32) -> (i32, i32) {
    %c0_i32 = arith.constant 0 : i32
    %c0_i32_0 = arith.constant 0 : i32
    return %c0_i32, %arg1 : i32, i32
  }
  func.func @transform_3(%arg0: i32, %arg1: i32) -> (i32, i32) {
    %c0_i32 = arith.constant 0 : i32
    return %arg0, %arg1 : i32, i32
  }
}

</mosaic_0001>

<bundles_post_ra>
// kernel: _lambda_.1
= control target key start
LH: loop header
LB: loop body
LE: loop exit
PB: predicated region body
PF: predicated region fallthrough
CT: control target
= control target key end

     0   :  { %8 = vsyncpa [#allocation3], 0  ;;  %s183_s0 = inlined_call_operand.vmem [shape: f32[8,128], index: 0, kind: input, shape index: {}]   ;;  %s184_s1 = inlined_call_operand.hbm [shape: f32[128,128], index: 1, kind: input, shape index: {}]   ;;  %s185_s2 = inlined_call_operand.vmem [shape: f32[1,128], index: 2, kind: input, shape index: {}]   ;;  %s186_s3 = inlined_call_operand.hbm [shape: f32[8,128], index: 3, kind: output, shape index: {}]  }
   0x1   :  { %9 = vsyncpa [#allocation4], 0  ;;  %s16_s14 = sshll.u32 %s184_s1, 4  ;;  %s147_s15 = smov [#allocation2]   ;;  %s17_s14 = int_to_ptr.hbm [resolvable:$true] %s16_s14 }
   0x2   :  { %s18_s16 = sshll.u32 %s147_s15, 4  ;;  %s148_s17 = smov 128   ;;  %s19_s16 = int_to_ptr.vmem [resolvable:$true] %s18_s16 }
   0x3   :  { %s149_s18 = smov 8  }
   0x4   :  { %24 = dma.hbm_to_vmem [thread:$0]  %s17_s14, 2048, %s19_s16, [#allocation3], %s148_s17, %s148_s17, %s149_s18  }
   0x5   :  { %143 = dma.done.wait [#allocation3], 2048  }
   0x6   :  { %144 = vsyncadd [#allocation3], 4294965248  ;;  %v47_v0 = vld [vmem:[#allocation2 + $0x78] sm:$0xff]  ;;  %v46_v1 = vld [vmem:[#allocation2 + $0x70] sm:$0xff]  ;;  %s150_s22 = smov [#allocation5]   ;;  %s80_s26 = sshll.u32 %s186_s3, 4  ;;  %s81_s26 = int_to_ptr.hbm [resolvable:$true] %s80_s26 }
   0x7   :  { %52 = vmatpush.msra.mxu0 %v47_v0  ;;  %v45_v2 = vld [vmem:[#allocation2 + $0x68] sm:$0xff]  ;;  %v44_v3 = vld [vmem:[#allocation2 + $0x60] sm:$0xff]  ;;  %v43_v4 = vld [vmem:[#allocation2 + $0x58] sm:$0xff]  ;;  %s78_s23 = sshll.u32 %s150_s22, 4  ;;  %s79_s23 = int_to_ptr.vmem [resolvable:$true] %s78_s23 }
   0x8   :  { %v42_v5 = vld [vmem:[#allocation2 + $0x50] sm:$0xff]  ;;  %v41_v6 = vld [vmem:[#allocation2 + $0x48] sm:$0xff]  ;;  %v40_v7 = vld [vmem:[#allocation2 + $0x40] sm:$0xff] }
   0x9   :  { %53 = vmatpush.msra.mxu0 %v46_v1  ;;  %v39_v8 = vld [vmem:[#allocation2 + $0x38] sm:$0xff]  ;;  %v38_v9 = vld [vmem:[#allocation2 + $0x30] sm:$0xff]  ;;  %v37_v10 = vld [vmem:[#allocation2 + $0x28] sm:$0xff] }
   0xa   :  { %v36_v11 = vld [vmem:[#allocation2 + $0x20] sm:$0xff]  ;;  %v35_v12 = vld [vmem:[#allocation2 + $0x18] sm:$0xff]  ;;  %v34_v13 = vld [vmem:[#allocation2 + $0x10] sm:$0xff] }
   0xb   :  { %54 = vmatpush.msra.mxu0 %v45_v2  ;;  %v33_v14 = vld [vmem:[#allocation2 + $0x8] sm:$0xff]  ;;  %v32_v15 = vld [vmem:[#allocation2] sm:$0xff] }
   0xc   :  { %v31_v16 = vld [vmem:[%s183_s0] sm:$0xff] }
   0xd   :  { %55 = vmatpush.msra.mxu0 %v44_v3  ;;  %v94_v17 = vld [vmem:[%s185_s2] ss:$0 sm:$0xff] }
   0xf   :  { %56 = vmatpush.msra.mxu0 %v43_v4 }
  0x11   :  { %57 = vmatpush.msra.mxu0 %v42_v5 }
  0x13   :  { %58 = vmatpush.msra.mxu0 %v41_v6 }
  0x15   :  { %59 = vmatpush.msra.mxu0 %v40_v7 }
  0x17   :  { %60 = vmatpush.msra.mxu0 %v39_v8 }
  0x19   :  { %61 = vmatpush.msra.mxu0 %v38_v9 }
  0x1b   :  { %62 = vmatpush.msra.mxu0 %v37_v10 }
  0x1d   :  { %63 = vmatpush.msra.mxu0 %v36_v11 }
  0x1f   :  { %64 = vmatpush.msra.mxu0 %v35_v12 }
  0x21   :  { %65 = vmatpush.msra.mxu0 %v34_v13 }
  0x23   :  { %66 = vmatpush.msra.mxu0 %v33_v14 }
  0x25   :  { %67 = vmatpush.msra.mxu0 %v32_v15 }
  0x26   :  { %68 = vmatmul.f32.vlgmr.msra.gmra.mxu0 %v31_v16 }
  0xa3   :  { %v69_v18 = vpop.f32.mrf.mxu0 }
  0xa4   :  { %v70_v19 = vadd.f32 %v94_v17, %v69_v18 }
  0xa6   :  { %72 = vst [vmem:[#allocation5] sm:$0xff] %v70_v19 }
  0xa7   :  { %83 = dma.vmem_to_hbm [thread:$0]  %s79_s23, 128, %s81_s26, [#allocation4]  }
  0xa8   :  { %145 = dma.done.wait [#allocation4], 128  }
  0xa9   :  { %146 = vsyncadd [#allocation4], 4294967168 }
  0xaa   :  { %88 = vsyncpa [#allocation3], 1 }
  0xab   :  { %89 = vsyncpa [#allocation4], 1 }

</bundles_post_ra>
